<compile_context>
chip_gen: v6e
topology: v6e:2x2x1
jax: 0.10.0
libtpu: 0.0.40
codegen_flags: <defaults>
</compile_context>

<pallas_src>
import functools

import jax
import jax.numpy as jnp
from jax.experimental import pallas as pl
from jax.experimental.pallas import tpu as pltpu

_LANE = 128


def _round_up(v, m):
    return (v + m - 1) // m * m


def _sublane_multiple(itemsize):
    # f32 -> 8, bf16 -> 16, int8/fp8 -> 32 (second-minor padding in VMEM).
    return max(8, 32 // int(itemsize))


def _vmem_limit_bytes():
    """Generation-aware scoped-VMEM limit with a safe fallback."""
    cap = 64 * 1024 * 1024  # conservative (v7x per-core) if query fails
    try:
        cap = int(pltpu.get_tpu_info().vmem_capacity_bytes)
    except Exception:
        pass
    # ~75% of physical, clamped to [32 MiB, 96 MiB]:
    #   128 MiB parts (v5e/v6e) -> 96 MiB, 64 MiB parts (v7x) -> 48 MiB.
    return int(max(32 * 1024 * 1024, min(96 * 1024 * 1024, (cap * 3) // 4)))


def _pick_l_tile(L, c_pad, itemsize, target_block_bytes, max_l_tile=None):
    """Largest lane-dense L tile whose VMEM block stays under the target."""
    per_lane = max(1, c_pad * itemsize)
    t = (target_block_bytes // per_lane) // _LANE * _LANE
    t = max(_LANE, t)
    cap = _round_up(L, _LANE)
    if max_l_tile is not None:
        cap = min(cap, max(_LANE, (int(max_l_tile) // _LANE) * _LANE))
    return int(max(_LANE, min(t, cap)))


# ---------------------------------------------------------------------------
# Kernels
# ---------------------------------------------------------------------------

def _gln_fused_kernel(w_ref, b_ref, x_ref, o_ref, *, inv_n, eps):
    """Single-pass GLN: stats + normalize from one VMEM-resident (1, C, L)."""
    x = x_ref[...].astype(jnp.float32)            # (1, C, L)
    s = jnp.sum(x)
    q = jnp.sum(x * x)
    mean = s * inv_n
    var = jnp.maximum(q * inv_n - mean * mean, 0.0)
    inv_std = jax.lax.rsqrt(var + eps)            # EUP; no divide
    scale = w_ref[...] * inv_std                  # (1, C, 1) f32
    shift = b_ref[...] - mean * scale
    o_ref[...] = (x * scale + shift).astype(o_ref.dtype)


def _gln_stats_kernel(x_ref, out_ref, acc_ref, *, l_tile, cps, L, mask_tail):
    """Streaming sum/sumsq; emits raw per-(batch, split) partials at the end."""
    j = pl.program_id(2)

    @pl.when(j == 0)
    def _init():
        acc_ref[0] = jnp.float32(0.0)
        acc_ref[1] = jnp.float32(0.0)

    x = x_ref[...].astype(jnp.float32)            # (1, C, l_tile)
    if mask_tail:
        # Out-of-bounds lanes of the boundary (or fully-OOB clamped) chunk hold
        # unspecified data -> zero them before accumulating.
        start = (pl.program_id(1) * cps + j) * l_tile
        lane = jax.lax.broadcasted_iota(jnp.int32, x.shape, 2)
        x = jnp.where(lane < (L - start), x, 0.0)

    acc_ref[0] += jnp.sum(x)
    acc_ref[1] += jnp.sum(x * x)

    @pl.when(j == cps - 1)
    def _finalize():
        shape = out_ref.shape                     # (1, 2, 128)
        s = jnp.full(shape, acc_ref[0], jnp.float32)
        q = jnp.full(shape, acc_ref[1], jnp.float32)
        row = jax.lax.broadcasted_iota(jnp.int32, shape, 1)
        out_ref[...] = jnp.where(row == 0, s, q)  # row0=sum, row1=sumsq


def _gln_norm_kernel(stats_ref, w_ref, b_ref, x_ref, o_ref):
    """y = x * scale + shift; scale/shift folded in-kernel from SMEM stats."""
    n = pl.program_id(0)
    mean = stats_ref[n, 0]                        # SMEM scalars
    inv_std = stats_ref[n, 1]
    scale = w_ref[...] * inv_std                  # (1, C, 1) f32
    shift = b_ref[...] - mean * scale
    x = x_ref[...].astype(jnp.float32)            # (1, C, l_tile)
    o_ref[...] = (x * scale + shift).astype(o_ref.dtype)


# ---------------------------------------------------------------------------
# Wrapper
# ---------------------------------------------------------------------------

def global_layer_norm(x, weight=None, bias=None, eps=1e-8, *,
                      max_l_tile=None, single_pass_max_bytes=None):
    """Pallas implementation of GlobalLayerNorm.forward.

    x: [N, C, L] or [N, C, K, S] (channels-first, like the PyTorch module).
    weight/bias: per-channel params with C elements total (any shape), or None
    (elementwise_affine=False).  `max_l_tile` / `single_pass_max_bytes` are
    testing/tuning overrides.
    """
    orig_shape = x.shape
    if x.ndim == 4:
        N, C, K, S = x.shape
        L = K * S
        x2 = x.reshape(N, C, L)
    elif x.ndim == 3:
        N, C, L = x.shape
        x2 = x
    else:
        raise ValueError("GlobalLayerNorm expects a 3D or 4D input")

    itemsize = jnp.dtype(x.dtype).itemsize
    c_pad = _round_up(C, _sublane_multiple(itemsize))   # input-dtype sublane pad
    c_pad_f32 = _round_up(C, 8)                         # f32 temporaries pad
    vmem_limit = _vmem_limit_bytes()
    inv_n = 1.0 / float(C * L)
    eps = float(eps)

    # Per-channel affine folded to (1, C, 1) f32 (ones/zeros if no affine).
    if weight is not None:
        w3 = jnp.asarray(weight, jnp.float32).reshape(1, C, 1)
        b3 = jnp.asarray(bias, jnp.float32).reshape(1, C, 1)
    else:
        w3 = jnp.ones((1, C, 1), jnp.float32)
        b3 = jnp.zeros((1, C, 1), jnp.float32)

    # ---- fast path: one fused pass if the full (1, C, L) slab fits in VMEM ---
    l_pad = _round_up(L, _LANE)
    block_bytes = c_pad * l_pad * itemsize
    f32_bytes = c_pad_f32 * l_pad * 4
    fused_need = 4 * block_bytes + 2 * f32_bytes        # in/out dbl-buf + temps
    fused_budget = (vmem_limit // 2 if single_pass_max_bytes is None
                    else int(single_pass_max_bytes))

    if fused_need <= fused_budget:
        out = pl.pallas_call(
            functools.partial(_gln_fused_kernel, inv_n=inv_n, eps=eps),
            out_shape=jax.ShapeDtypeStruct((N, C, L), x.dtype),
            grid=(N,),
            in_specs=[
                pl.BlockSpec((1, C, 1), lambda n: (0, 0, 0)),
                pl.BlockSpec((1, C, 1), lambda n: (0, 0, 0)),
                pl.BlockSpec((1, C, L), lambda n: (n, 0, 0)),
            ],
            out_specs=pl.BlockSpec((1, C, L), lambda n: (n, 0, 0)),
            compiler_params=pltpu.CompilerParams(
                dimension_semantics=("parallel",),
                vmem_limit_bytes=vmem_limit),
            cost_estimate=pl.CostEstimate(
                flops=int(5 * N * C * L),
                transcendentals=int(N),
                bytes_accessed=int(2 * N * C * L * itemsize)),
        )(w3, b3, x2)
        return out.reshape(orig_shape)

    # ---- streaming path -----------------------------------------------------
    pipe_budget = vmem_limit // 2

    # Phase 1 streams only the input (2 buffers) -> ~2x larger tiles than
    # phase 2 (input + output = 4 buffers, plus f32 temporaries).
    l_tile1 = _pick_l_tile(L, c_pad, itemsize,
                           min(8 * 1024 * 1024, pipe_budget // 3), max_l_tile)
    total_chunks = pl.cdiv(L, l_tile1)
    # When N == 1 split the chunk axis in two so a v7x megacore can use both
    # TensorCores during the reduction (no effect on single-TC v5e/v6e).
    num_splits = 2 if (N == 1 and total_chunks >= 2) else 1
    cps = pl.cdiv(total_chunks, num_splits)
    mask_tail = (num_splits * cps * l_tile1) != L

    def x_map1(n, s, j):
        # Clamp so fully-out-of-range chunks (odd chunk counts with 2 splits)
        # still DMA a valid block; their contribution is masked to zero.
        return (n, 0, jnp.minimum(s * cps + j, total_chunks - 1))

    stats_raw = pl.pallas_call(
        functools.partial(_gln_stats_kernel, l_tile=l_tile1, cps=cps, L=L,
                          mask_tail=mask_tail),
        out_shape=jax.ShapeDtypeStruct((N * num_splits, 2, _LANE), jnp.float32),
        grid=(N, num_splits, cps),
        in_specs=[pl.BlockSpec((1, C, l_tile1), x_map1)],
        out_specs=pl.BlockSpec((1, 2, _LANE),
                               lambda n, s, j: (n * num_splits + s, 0, 0)),
        scratch_shapes=[pltpu.SMEM((2,), jnp.float32)],
        compiler_params=pltpu.CompilerParams(
            dimension_semantics=("parallel", "parallel", "arbitrary"),
            vmem_limit_bytes=vmem_limit),
        cost_estimate=pl.CostEstimate(
            flops=int(3 * N * C * L),
            transcendentals=0,
            bytes_accessed=int(N * C * L * itemsize)),
    )(x2)

    # Tiny O(N) epilogue: combine split partials, produce (mean, inv_std).
    part = stats_raw[:, :, 0].reshape(N, num_splits, 2)
    tot = jnp.sum(part, axis=1)                          # (N, 2)
    mean = tot[:, 0] * inv_n
    var = jnp.maximum(tot[:, 1] * inv_n - mean * mean, 0.0)
    inv_std = jax.lax.rsqrt(var + eps)
    stats_small = jnp.stack([mean, inv_std], axis=1).astype(jnp.float32)  # (N,2)

    # Phase 2: stream lane-dense tiles; ragged tail stores are clipped by
    # Pallas, so no padding / post-slice HBM passes are needed.
    l_tile2 = _pick_l_tile(L, c_pad, itemsize,
                           min(4 * 1024 * 1024, pipe_budget // 6), max_l_tile)
    num_chunks2 = pl.cdiv(L, l_tile2)

    out = pl.pallas_call(
        _gln_norm_kernel,
        out_shape=jax.ShapeDtypeStruct((N, C, L), x.dtype),
        grid=(N, num_chunks2),
        in_specs=[
            pl.BlockSpec(memory_space=pltpu.MemorySpace.SMEM),   # (N, 2) stats
            pl.BlockSpec((1, C, 1), lambda n, j: (0, 0, 0)),     # weight
            pl.BlockSpec((1, C, 1), lambda n, j: (0, 0, 0)),     # bias
            pl.BlockSpec((1, C, l_tile2), lambda n, j: (n, 0, j)),
        ],
        out_specs=pl.BlockSpec((1, C, l_tile2), lambda n, j: (n, 0, j)),
        compiler_params=pltpu.CompilerParams(
            dimension_semantics=("parallel", "parallel"),
            vmem_limit_bytes=vmem_limit),
        cost_estimate=pl.CostEstimate(
            flops=int(2 * N * C * L),
            transcendentals=0,
            bytes_accessed=int(2 * N * C * L * itemsize)),
    )(stats_small, w3, b3, x2)

    return out.reshape(orig_shape)


# ---------------------------------------------------------------------------
# Reference + test
# ---------------------------------------------------------------------------

def _reference(x, weight, bias, eps=1e-8):
    """Plain-JAX port of the PyTorch forward for verification."""
    axes = tuple(range(1, x.ndim))
    mean = jnp.mean(x, axes, keepdims=True)
    var = jnp.mean((x - mean) ** 2, axes, keepdims=True)
    y = (x - mean) / jnp.sqrt(var + eps)
    if weight is not None:
        shape = (1, -1) + (1,) * (x.ndim - 2)
        y = weight.reshape(shape) * y + bias.reshape(shape)
    return y


if __name__ == "__main__":
    key = jax.random.PRNGKey(0)
    k1, k2, k3, k4, k5 = jax.random.split(key, 5)

    C = 4
    w4 = 1.0 + 0.1 * jax.random.normal(k1, (C, 1, 1), dtype=jnp.float32)
    b4 = 0.1 * jax.random.normal(k2, (C, 1, 1), dtype=jnp.float32)

    # 4D case [N, C, K, S]: small -> fused single-pass path.
    x4 = jax.random.normal(k3, (2, C, 16, 16), dtype=jnp.float32)
    y4 = jax.block_until_ready(global_layer_norm(x4, w4, b4))
    assert y4.shape == x4.shape
    assert jnp.allclose(y4, _reference(x4, w4, b4), atol=2e-5, rtol=2e-5), \
        "4D fused mismatch"

    # 3D case [N, C, L], forced two-phase streaming with ragged tail
    # (L=300 not a multiple of the 128-lane tile -> in-kernel tail masking).
    w3 = w4.reshape(C, 1)
    b3 = b4.reshape(C, 1)
    x3 = jax.random.normal(k4, (2, C, 300), dtype=jnp.float32)
    y3 = jax.block_until_ready(global_layer_norm(
        x3, w3, b3, single_pass_max_bytes=0, max_l_tile=128))
    assert y3.shape == x3.shape
    assert jnp.allclose(y3, _reference(x3, w3, b3), atol=2e-5, rtol=2e-5), \
        "3D streaming mismatch"

    # N=1 streaming: exercises the 2-way chunk split (megacore), the clamped
    # fully-out-of-range tail chunk, and elementwise_affine=False.
    x1 = jax.random.normal(k5, (1, C, 600), dtype=jnp.float32)
    y1 = jax.block_until_ready(global_layer_norm(
        x1, None, None, single_pass_max_bytes=0, max_l_tile=128))
    assert y1.shape == x1.shape
    assert jnp.allclose(y1, _reference(x1, None, None), atol=2e-5, rtol=2e-5), \
        "N=1 split streaming mismatch"

    print("KERNEL_OK")
</pallas_src>

<mosaic_0001>
module attributes {stable_mosaic.version = 11 : i64} {
  func.func @_gln_fused_kernel(%arg0: i32, %arg1: memref<1x4x1xf32, #tpu.memory_space<vmem>>, %arg2: memref<1x4x1xf32, #tpu.memory_space<vmem>>, %arg3: memref<1x4x256xf32, #tpu.memory_space<vmem>>, %arg4: memref<1x4x256xf32, #tpu.memory_space<vmem>>) attributes {dimension_semantics = [#tpu.dimension_semantics<parallel>], iteration_bounds = array<i64: 2>, scalar_prefetch = 0 : i64, scratch_operands = 0 : i64, tpu.core_type = #tpu.core_type<tc>, window_params = [{pipeline_mode = #tpu.pipeline_mode<synchronous>, transform_indices = @transform_0, window_bounds = array<i64: 1, 4, 1>}, {pipeline_mode = #tpu.pipeline_mode<synchronous>, transform_indices = @transform_1, window_bounds = array<i64: 1, 4, 1>}, {transform_indices = @transform_2, window_bounds = array<i64: 1, 4, 256>}, {transform_indices = @transform_3, window_bounds = array<i64: 1, 4, 256>}]} {
    %c0 = arith.constant 0 : index
    %c0_0 = arith.constant 0 : index
    %c0_1 = arith.constant 0 : index
    %0 = vector.load %arg3[%c0, %c0_0, %c0_1] : memref<1x4x256xf32, #tpu.memory_space<vmem>>, vector<1x4x256xf32>
    %1 = vector.shape_cast %0 : vector<1x4x256xf32> to vector<1x1x4x256xf32>
    %cst = arith.constant dense<0.000000e+00> : vector<1xf32>
    %2 = vector.multi_reduction <add>, %1, %cst [1, 2, 3] : vector<1x1x4x256xf32> to vector<1xf32>
    %3 = vector.shape_cast %2 : vector<1xf32> to vector<1x1x1x1xf32>
    %4 = vector.extract %3[0, 0, 0, 0] : f32 from vector<1x1x1x1xf32>
    %5 = arith.mulf %0, %0 : vector<1x4x256xf32>
    %6 = vector.shape_cast %5 : vector<1x4x256xf32> to vector<1x1x4x256xf32>
    %cst_2 = arith.constant dense<0.000000e+00> : vector<1xf32>
    %7 = vector.multi_reduction <add>, %6, %cst_2 [1, 2, 3] : vector<1x1x4x256xf32> to vector<1xf32>
    %8 = vector.shape_cast %7 : vector<1xf32> to vector<1x1x1x1xf32>
    %9 = vector.extract %8[0, 0, 0, 0] : f32 from vector<1x1x1x1xf32>
    %cst_3 = arith.constant 9.765625E-4 : f32
    %10 = arith.mulf %4, %cst_3 : f32
    %cst_4 = arith.constant 9.765625E-4 : f32
    %11 = arith.mulf %9, %cst_4 : f32
    %12 = arith.mulf %10, %10 : f32
    %13 = arith.subf %11, %12 : f32
    %cst_5 = arith.constant 0.000000e+00 : f32
    %14 = arith.maximumf %13, %cst_5 : f32
    %cst_6 = arith.constant 9.99999993E-9 : f32
    %15 = arith.addf %14, %cst_6 : f32
    %16 = math.rsqrt %15 : f32
    %c0_7 = arith.constant 0 : index
    %c0_8 = arith.constant 0 : index
    %c0_9 = arith.constant 0 : index
    %17 = vector.load %arg1[%c0_7, %c0_8, %c0_9] : memref<1x4x1xf32, #tpu.memory_space<vmem>>, vector<1x4x1xf32>
    %18 = vector.broadcast %16 : f32 to vector<1x4x1xf32>
    %19 = arith.mulf %17, %18 : vector<1x4x1xf32>
    %c0_10 = arith.constant 0 : index
    %c0_11 = arith.constant 0 : index
    %c0_12 = arith.constant 0 : index
    %20 = vector.load %arg2[%c0_10, %c0_11, %c0_12] : memref<1x4x1xf32, #tpu.memory_space<vmem>>, vector<1x4x1xf32>
    %21 = vector.broadcast %10 : f32 to vector<1x4x1xf32>
    %22 = arith.mulf %21, %19 : vector<1x4x1xf32>
    %23 = arith.subf %20, %22 : vector<1x4x1xf32>
    %24 = vector.broadcast %19 : vector<1x4x1xf32> to vector<1x4x256xf32>
    %25 = arith.mulf %0, %24 : vector<1x4x256xf32>
    %26 = vector.broadcast %23 : vector<1x4x1xf32> to vector<1x4x256xf32>
    %27 = arith.addf %25, %26 : vector<1x4x256xf32>
    %c0_13 = arith.constant 0 : index
    %c0_14 = arith.constant 0 : index
    %c0_15 = arith.constant 0 : index
    %28 = vector.load %arg4[%c0_13, %c0_14, %c0_15] : memref<1x4x256xf32, #tpu.memory_space<vmem>>, vector<1x4x256xf32>
    tpu.vector_store %arg4[%c0_13, %c0_14, %c0_15], %27 {strides = array<i32>} : memref<1x4x256xf32, #tpu.memory_space<vmem>>, vector<1x4x256xf32>,
    return
  }
  func.func @transform_0(%arg0: i32) -> (i32, i32, i32) {
    %c0_i32 = arith.constant 0 : i32
    %c0_i32_0 = arith.constant 0 : i32
    %c0_i32_1 = arith.constant 0 : i32
    %c0_i32_2 = arith.constant 0 : i32
    return %c0_i32, %c0_i32_0, %c0_i32_1 : i32, i32, i32
  }
  func.func @transform_1(%arg0: i32) -> (i32, i32, i32) {
    %c0_i32 = arith.constant 0 : i32
    %c0_i32_0 = arith.constant 0 : i32
    %c0_i32_1 = arith.constant 0 : i32
    %c0_i32_2 = arith.constant 0 : i32
    return %c0_i32, %c0_i32_0, %c0_i32_1 : i32, i32, i32
  }
  func.func @transform_2(%arg0: i32) -> (i32, i32, i32) {
    %c0_i32 = arith.constant 0 : i32
    %c0_i32_0 = arith.constant 0 : i32
    %c0_i32_1 = arith.constant 0 : i32
    return %arg0, %c0_i32, %c0_i32_0 : i32, i32, i32
  }
  func.func @transform_3(%arg0: i32) -> (i32, i32, i32) {
    %c0_i32 = arith.constant 0 : i32
    %c0_i32_0 = arith.constant 0 : i32
    %c0_i32_1 = arith.constant 0 : i32
    return %arg0, %c0_i32, %c0_i32_0 : i32, i32, i32
  }
}

</mosaic_0001>

<bundles_post_ra>
// kernel: tpu_custom_call.1
= control target key start
LH: loop header
LB: loop body
LE: loop exit
PB: predicated region body
PF: predicated region fallthrough
CT: control target
= control target key end

     0   :  { %8 = vsyncpa [#allocation3], 0  ;;  %s702_s0 = inlined_call_operand.vmem [shape: f32[1,4,1], index: 0, kind: input, shape index: {}]   ;;  %s703_s1 = inlined_call_operand.vmem [shape: f32[1,4,1], index: 1, kind: input, shape index: {}]   ;;  %s704_s2 = inlined_call_operand.hbm [shape: f32[2,4,256], index: 2, kind: input, shape index: {}]   ;;  %s705_s3 = inlined_call_operand.hbm [shape: f32[2,4,256], index: 3, kind: output, shape index: {}]  }
   0x1   :  { %10 = vsyncpa [#allocation3 + $0x1], 0 }
   0x2   :  { %11 = vsyncpa [#allocation4], 0 }
   0x3   :  { %13 = vsyncpa [#allocation4 + $0x1], 0  ;;  %s543_s12 = smov 0   ;;  %s545_s13 = smov 0  }
   0x4   :  { %s547_s14 = smov 0   ;;  %s549_s15 = smov 0  }
   0x5 LB: > { %s564_s16 = sadd.s32 4294967295, %s516_s15   ;;  %s348_s17 = sadd.s32 4294967294, %s516_s15   ;;  %s516_s15 = sphi %s549_s15, %s722_s15   ;;  %s512_s14 = sphi %s547_s14, %s721_s14   ;;  %s508_s13 = sphi %s545_s13, %s720_s13   ;;  %s504_s12 = sphi %s543_s12, %s719_s12  }
   0x6   : > { %s568_s18 = sadd.s32 1, %s516_s15   ;;  %s68_s19 = sadd.s32 1, %s512_s14 }
   0x7   : > { %s65_s20 = ssub.s32 %s516_s15, %s568_s18  ;;  %p75_p0 = scmp.ne.s32.totalorder %s512_s14, %s508_s13 }
   0x8   : > { %p66_p1 = scmp.eq.s32.totalorder %s65_s20, 0  ;;  %p76_p2 = scmp.eq.s32.totalorder %s516_s15, 0 }
   0x9   : > { %p81_p3 = scmp.ne.s32.totalorder %s508_s13, %s504_s12  ;;  %p82_p4 = scmp.eq.s32.totalorder %s564_s16, 0 }
   0xa   : > { %s580_s21 = scalar_select %p66_p1, %s512_s14, %s68_s19  }
   0xb   : > { %p582_p5 = por %p76_p2, %p75_p0  ;;  %p586_p6 = por %p82_p4, %p81_p3 }
   0xc   : > { %p105_p7 = scmp.eq.s32.totalorder %s564_s16, 1  ;;  %p111_p8 = scmp.eq.s32.totalorder %s348_s17, 1 }
   0xd   : > { %s709_s23 = scalar_select %p586_p6, 1, 0 }
   0xe   : > { %p382_p10 = scmp.lt.s32.totalorder %s516_s15, 2  ;;  %p593_p11 = por %p105_p7, %p75_p0 }
   0xf   : > { %p597_p12 = por %p111_p8, %p81_p3  ;;  %s137_s26 = sand.u32 1, %s512_s14  }
  0x10   : > { %s710_s24 = scalar_select %p593_p11, 1, 0 }
  0x11   : > { %s711_s25 = scalar_select %p597_p12, 1, 0 }
  0x12   : > { %s362_s27 = sshll.u32 %s516_s15, 7  ;;  %s351_s28 = sshll.u32 %s137_s26, 3 }
  0x13   : > { %s606_s4 = scalar_lea.hbm %s704_s2, %s362_s27  ;;  %s141_s5 = scalar_lea.vmem [#allocation2], %s351_s28 }
  0x14   : > { %s149_s6 = sshll.u32 %s141_s5, 4  ;;  %p610_p13 = pnand %p382_p10, %p582_p5  ;;  %s614_s6 = int_to_ptr.vmem [resolvable:$true] %s149_s6 }
  0x15   : > { %s138_s8 = scalar_lea.sflag [#allocation3], %s137_s26  ;;  %s424_s9 = scalar_lea.hbm %s606_s4, 128 }
  0x16   : > { %p425_p2 = scmp.ne.s32.totalorder %s606_s4, %s424_s9  ;;  %p426_p3 = pneg %p610_p13 }
  0x17   : > { %s429_s17 = scalar_lea.hbm %s704_s2, 256  ;;  %p430_p5 = scmp.lt.s32.totalorder %s606_s4, %s704_s2 }
  0x18   : > { %p427_p4 = pnand %p426_p3, %p425_p2  ;;  %p431_p8 = scmp.lt.s32.totalorder %s429_s17, %s424_s9 }
  0x1a   : > { %p428_p7 = pneg %p427_p4  ;;  %p432_p10 = por %p431_p8, %p430_p5 }
  0x1c   : > { %p433_p9 = pnand %p432_p10, %p428_p7 }
  0x1e   : > { %436 = shalt.err (!%p433_p9)
}
  0x1f   : > { %s437_s22 = scalar_lea.vmem %s614_s6, 128  ;;  %s518_s26 = smov [#allocation2]  }
  0x20   : > { %p438_p0 = scmp.ne.s32.totalorder %s614_s6, %s437_s22  ;;  %s442_s27 = sshll.u32 %s518_s26, 4  ;;  %s443_s27 = int_to_ptr.vmem [resolvable:$false] %s442_s27 }
  0x21   : > { %s444_s28 = scalar_lea.vmem %s443_s27, 256  ;;  %p445_p4 = scmp.lt.s32.totalorder %s614_s6, %s443_s27 }
  0x22   : > { %p440_p1 = pnand %p438_p0, %p426_p3  ;;  %p446_p12 = scmp.lt.s32.totalorder %s444_s28, %s437_s22 }
  0x24   : > { %p441_p2 = pneg %p440_p1  ;;  %p447_p11 = por %p446_p12, %p445_p4 }
  0x26   : > { %p448_p6 = pnand %p447_p11, %p441_p2 }
  0x28   : > { %451 = shalt.err (!%p448_p6)
}
  0x29   : > { %377 = dma.hbm_to_vmem [thread:$0]  (!%p610_p13), %s606_s4, 128, %s614_s6, %s138_s8  }
  0x2a   : > { %p713_p9 = scmp.lt.s32.totalorder %s516_s15, 3  ;;  %p714_p7 = scmp.ge.s32.totalorder %s516_s15, 1 }
  0x2c   : > { %p155_p0 = pnand %p714_p7, %p713_p9 }
  0x2d   : > { %s641_s29 = sand.u32 (!%p155_p0), 1, %s508_s13   ;;  %p715_p6 = scmp.ne.s32.totalorder (!%p155_p0), %s709_s23, 0 }
  0x2e   : > { %158 = sbr.rel (%p155_p0) target bundleno = 482 (0x1e2), region = 32  ;;  %s355_s30 = sshll.u32 (!%p155_p0), %s641_s29, 3 }
  0x2f   : > { %s161_s5 = scalar_lea.sflag (!%p155_p0), [#allocation3], %s641_s29  ;;  %s164_s7 = scalar_lea.vmem (!%p155_p0), [#allocation2], %s355_s30 }
  0x33   : > { %495 = dma.done.wait (%p715_p6), %s161_s5, 128  }
  0x34   : > { %497 = vsyncadd (%p715_p6), %s161_s5, 4294967168  ;;  %vm191_vm0 = vcmask 1043456   ;;  %v651_v0 = vld [vmem:[%s164_s7] sm:$0xff]  ;;  %v519_v23 = vmov 0   ;;  %s520_s11 = smov 0.0   ;;  %v243_v36 = vlaneseq  ;;  %s363_s5 = sshll.u32 %s564_s16, 7 }
  0x35   : > { %v189_v1 = vcombine.high %v651_v0, %v651_v0  ;;  %v192_v2 = vsel %vm191_vm0, %v651_v0, 0.0  ;;  %v204_v3 = vmul.f32 %v651_v0, %v651_v0  ;;  %419 = vset.pattern.permute.xlu1 %v519_v23  ;;  %420 = vset.pattern.permute.xlu0 %v519_v23  ;;  %v229_v27 = vld [vmem:[%s702_s0] sm:$0xf]  ;;  %v521_v34 = vmov 839922192   ;;  %s186_s7 = scalar_lea.vmem [#allocation5], %s355_s30 }
  0x36   : > { %v232_v31 = vld [vmem:[%s703_s1] sm:$0xf]  ;;  %v241_v35 = vunpack.c.l.s4 %v521_v34  ;;  %v244_v38 = vshrl.u32 %v243_v36, 7  ;;  %p716_p12 = scmp.ne.s32.totalorder %s710_s24, 0  ;;  %s522_s16 = smov [#allocation5]  }
  0x37   : > { %v193_v4 = vsel %vm191_vm0, %v189_v1, 0.0  ;;  %v206_v5 = vcombine.high %v204_v3, %v204_v3  ;;  %v208_v6 = vsel %vm191_vm0, %v204_v3, 0.0 }
  0x38   : > { %v194_v7 = vadd.f32 %v193_v4, %v192_v2  ;;  %v242_v37 = vunpack.c.0.s8 %v241_v35 }
  0x39   : > { %v209_v8 = vsel %vm191_vm0, %v206_v5, 0.0 }
  0x3a   : > { %195 = vadd.xlane.f32.xlu0 %v194_v7  ;;  %v210_v9 = vadd.f32 %v209_v8, %v208_v6  ;;  %v245_v39 = vsub.s32 %v242_v37, %v244_v38 }
  0x3e   : > { %211 = vadd.xlane.f32.xlu0 %v210_v9 }
  0xc3   : > { %v196_v10 = vpop.xlane.xlu0 %195 }
  0xc4   : > { %v197_v11 = vrot.slane %v196_v10, 4 }
  0xc6   : > { %v198_v12 = vadd.f32 %v197_v11, %v196_v10 }
  0xc7   : > { %v212_v13 = vpop.xlane.xlu0 %211 }
  0xc8   : > { %v199_v14 = vrot.slane %v198_v12, 2  ;;  %v213_v15 = vrot.slane %v212_v13, 4 }
  0xca   : > { %v214_v16 = vadd.f32 %v213_v15, %v212_v13  ;;  %v200_v17 = vadd.f32 %v199_v14, %v198_v12 }
  0xcc   : > { %v215_v18 = vrot.slane %v214_v16, 2  ;;  %v201_v19 = vrot.slane %v200_v17, 1 }
  0xce   : > { %v216_v20 = vadd.f32 %v215_v18, %v214_v16  ;;  %v202_v21 = vadd.f32 %v201_v19, %v200_v17 }
  0xd0   : > { %364 = vpush %v202_v21  ;;  %v217_v22 = vrot.slane %v216_v20, 1 }
  0xd2   : > { %v218_v24 = vadd.f32 %v217_v22, %v216_v20 }
  0xd4   : > { %366 = vpush %v218_v24 }
 0x101   : > { %s365_s23 = spop %364 }
 0x102   : > { %s220_s4 = smul.f32 0.0009765625, %s365_s23  ;;  %s278_s23 = sshll.u32 %s186_s7, 4  ;;  %s279_s23 = int_to_ptr.vmem [resolvable:$true] %s278_s23 }
 0x104   : > { %s222_s6 = smul.f32 %s220_s4, %s220_s4  ;;  %v233_v30 = vstv %s220_s4 }
 0x105   : > { %s367_s8 = spop %366 }
 0x106   : > { %s221_s9 = smul.f32 0.0009765625, %s367_s8  ;;  %s276_s8 = scalar_lea.hbm %s705_s3, %s363_s5 }
 0x108   : > { %s223_s10 = ssub.f32 %s221_s9, %s222_s6  ;;  %s264_s9 = scalar_lea.sflag [#allocation4], %s641_s29 }
 0x10a   : > { %s224_s17 = smax.f32 %s520_s11, %s223_s10  ;;  %s452_s10 = scalar_lea.vmem %s279_s23, 128 }
 0x10b   : > { %s225_s19 = sadd.f32 1e-08, %s224_s17  ;;  %p453_p11 = scmp.ne.s32.totalorder %s279_s23, %s452_s10 }
 0x10c   : > { %s456_s11 = sshll.u32 %s522_s16, 4  ;;  %s457_s11 = int_to_ptr.vmem [resolvable:$false] %s456_s11 }
 0x10d   : > { %v226_v25 = vstv %s225_s19  ;;  %p454_p13 = pnand %p453_p11, %p716_p12  ;;  %s458_s30 = scalar_lea.vmem %s457_s11, 256 }
 0x10e   : > { %422 = vrsqrt.f32 %v226_v25  ;;  %p459_p3 = scmp.lt.s32.totalorder %s279_s23, %s457_s11  ;;  %p460_p5 = scmp.lt.s32.totalorder %s458_s30, %s452_s10 }
 0x10f   : > { %p455_p1 = pneg %p454_p13 }
 0x110   : > { %p461_p8 = por %p460_p5, %p459_p3 }
 0x112   : > { %p462_p10 = pnand %p461_p8, %p455_p1 }
 0x11b   : > { %v423_v26 = vpop.eup %422 }
 0x11c   : > { %368 = vpush %v423_v26 }
 0x14d   : > { %s369_s26 = spop %368 }
 0x14e   : > { %v230_v28 = vstv %s369_s26 }
 0x14f   : > { %v231_v29 = vmul.f32 %v230_v28, %v229_v27 }
 0x151   : > { %v234_v32 = vmul.f32 %v233_v30, %v231_v29  ;;  %238 = vperm.xlu1 %419, %v231_v29  }
 0x153   : > { %v235_v33 = vsub.f32 %v232_v31, %v234_v32 }
 0x155   : > { %251 = vperm.xlu1 %419, %v235_v33  }
 0x1cc   : > { %v239_v40 = vpop.permute.xlu1 %238 }
 0x1cd   : > { %v246_v41 = vrot.slane %v239_v40, %v245_v39 }
 0x1cf   : > { %v248_v43 = vmul.f32 %v246_v41, %v651_v0 }
 0x1d0   : > { %v252_v42 = vpop.permute.xlu1 %251 }
 0x1d1   : > { %v259_v44 = vrot.slane %v252_v42, %v245_v39 }
 0x1d3   : > { %v261_v45 = vadd.f32 %v259_v44, %v248_v43 }
 0x1d5   : > { %262 = vst [vmem:[%s186_s7] sm:$0xff] %v261_v45 }
 0x1d6   : > { %465 = shalt.err (!%p462_p10)
}
 0x1d7   : > { %s466_s17 = scalar_lea.hbm %s276_s8, 128  ;;  %s470_s20 = scalar_lea.hbm %s705_s3, 256 }
 0x1d8   : > { %p467_p2 = scmp.ne.s32.totalorder %s276_s8, %s466_s17  ;;  %p471_p7 = scmp.lt.s32.totalorder %s276_s8, %s705_s3 }
 0x1d9   : > { %p472_p0 = scmp.lt.s32.totalorder %s470_s20, %s466_s17 }
 0x1da   : > { %p468_p4 = pnand %p467_p2, %p716_p12 }
 0x1db   : > { %p473_p6 = por %p472_p0, %p471_p7 }
 0x1dc   : > { %p469_p9 = pneg %p468_p4 }
 0x1de   : > { %p474_p11 = pnand %p473_p6, %p469_p9 }
 0x1e0   : > { %477 = shalt.err (!%p474_p11)
}
 0x1e1   : > { %372 = dma.vmem_to_hbm [thread:$0]  (%p716_p12), %s279_s23, 128, %s276_s8, %s264_s9  }
 0x1e2 PF: > { %s290_s27 = sand.u32 1, %s504_s12   ;;  %p717_p13 = scmp.ne.s32.totalorder %s711_s25, 0 }
 0x1e3   : > { %p718_p1 = scmp.ge.s32.totalorder %s516_s15, 2  ;;  %s291_s28 = scalar_lea.sflag [#allocation4], %s290_s27 }
 0x1e5   : > { %p379_p3 = pnand %p718_p1, %p717_p13 }
 0x1e7   : > { %p380_p5 = pneg %p379_p3 }
 0x1e9   : > { %499 = dma.done.wait (%p380_p5), %s291_s28, 128  }
 0x1ea   : > { %501 = vsyncadd (%p380_p5), %s291_s28, 4294967168  ;;  %p16_p8 = scmp.ge.s32.totalorder %s568_s18, 4   ;;  %s719_s12 = smov %s508_s13 }
 0x1eb   : > { %s720_s13 = smov %s512_s14  ;;  %s721_s14 = smov %s580_s21 }
 0x1ec   : > { %s722_s15 = smov %s568_s18  ;;  %18 = sbr.rel (!%p16_p8) target bundleno = 5 (0x5), region = 77 }
 0x1f1   :  { %296 = vsyncpa [#allocation3], 1 }
 0x1f2   :  { %298 = vsyncpa [#allocation3 + $0x1], 1 }
 0x1f3   :  { %299 = vsyncpa [#allocation4], 1 }
 0x1f4   :  { %301 = vsyncpa [#allocation4 + $0x1], 1 }

</bundles_post_ra>
